<compile_context>
chip_gen: v5e
topology: v5e:2x2
jax: 0.10.0
libtpu: 0.0.40
codegen_flags: <defaults>
</compile_context>

<pallas_src>
import functools

import jax
import jax.numpy as jnp
from jax import lax
from jax.experimental import pallas as pl
from jax.experimental.pallas import tpu as pltpu


_NEG_BIG = -1e30  # finite "minus infinity" for padded class lanes


def _round_up(x, m):
    return ((x + m - 1) // m) * m


def _pick_batch_tile(batch, c_padded, in_itemsize):
    # Live VMEM per row ~= double-buffered input tile + ~5 f32 [tb, Cp] temps
    # (shifted, exp(shifted), one-hot select, masked log-prob, compiler temps).
    per_row = c_padded * (2 * in_itemsize + 5 * 4)
    budget = 16 * 1024 * 1024  # conservative for v7x (64 MiB physical VMEM)
    tb = max(8, min(1024, (budget // per_row) // 8 * 8))
    return int(min(tb, _round_up(batch, 8)))


def _focal_loss_kernel(*refs, gamma, ignore_index, use_alpha):
    if use_alpha:
        logits_ref, targets_ref, alpha_ref, part_ref = refs
    else:
        logits_ref, targets_ref, part_ref = refs
        alpha_ref = None

    logits = logits_ref[...].astype(jnp.float32)            # [tb, Cp]
    tgt = targets_ref[...]                                    # [tb, 1] int32

    # --- log-softmax pieces (only the target-class log-prob is gathered) ---
    m = jnp.max(logits, axis=-1, keepdims=True)               # [tb, 1]
    shifted = logits - m                                       # [tb, Cp]
    lse = jnp.log(jnp.sum(jnp.exp(shifted), axis=-1, keepdims=True))  # [tb, 1]

    # one-hot(target) realised as an iota compare (no gather on TPU).
    col = lax.broadcasted_iota(jnp.int32, shifted.shape, 1)
    is_tgt = col == tgt                                        # [tb, Cp] bool

    valid = (tgt != ignore_index).astype(jnp.float32)          # [tb, 1]

    # log_prob at the target class: exactly one selected lane per valid row
    # (ignored rows select nothing when ignore_index is out of [0, C); if it
    # is in-range the row is still zeroed by `valid` below).
    logp_t = jnp.sum(jnp.where(is_tgt, shifted - lse, 0.0),
                     axis=-1, keepdims=True)                   # [tb, 1]

    # pt = softmax prob of the target class; 0 for ignored rows (matches the
    # reference's (one_hot * mask * probs).sum()).  exp on [tb,1] only.
    pt = jnp.exp(logp_t) * valid                               # [tb, 1]

    one_minus_pt = 1.0 - pt
    if gamma == 2.0:
        focal_w = one_minus_pt * one_minus_pt
    elif gamma == 1.0:
        focal_w = one_minus_pt
    elif gamma == 0.0:
        focal_w = jnp.ones_like(one_minus_pt)
    else:
        focal_w = one_minus_pt ** jnp.float32(gamma)

    if use_alpha:
        alpha = alpha_ref[...].astype(jnp.float32)              # [1, Cp]
        alpha_t = jnp.sum(jnp.where(is_tgt, alpha, 0.0),
                          axis=-1, keepdims=True)               # [tb, 1]
        focal_w = focal_w * alpha_t

    loss = -(focal_w * logp_t) * valid                          # [tb, 1]

    # Per-tile partials: lane 0 = sum of loss, lane 1 = number of valid rows.
    loss_part = jnp.sum(loss)
    cnt_part = jnp.sum(valid)
    lane = lax.broadcasted_iota(jnp.int32, (1, 8, 128), 2)
    part_ref[...] = jnp.where(lane == 0, loss_part,
                              jnp.where(lane == 1, cnt_part, 0.0))


def focal_loss(logits, targets, alpha=None, *, gamma=2.0, reduction="mean",
               ignore_index=-100, batch_tile=None):
    """Focal loss. logits [B, C] (f32 or bf16), targets [B] int, alpha [C]."""
    B, C = logits.shape

    # Lane-dense class dim: pad to a multiple of 128 only when C > 128.
    if C > 128 and C % 128 != 0:
        Cp = _round_up(C, 128)
    else:
        Cp = C

    use_alpha = alpha is not None

    if batch_tile is None:
        tb = _pick_batch_tile(B, Cp, jnp.dtype(logits.dtype).itemsize)
    else:
        tb = int(batch_tile)
    assert tb % 8 == 0 and tb > 0, "batch_tile must be a positive multiple of 8"

    B_pad = _round_up(B, tb)
    num_tiles = B_pad // tb

    # --- pad inputs; padded rows use ignore_index so they contribute 0 ---
    if Cp != C:
        logits = jnp.pad(logits, ((0, 0), (0, Cp - C)), constant_values=_NEG_BIG)
    if B_pad != B:
        logits = jnp.pad(logits, ((0, B_pad - B), (0, 0)))
    targets = targets.astype(jnp.int32)
    if B_pad != B:
        targets = jnp.pad(targets, (0, B_pad - B), constant_values=ignore_index)
    targets2d = targets.reshape(B_pad, 1)

    ins = [logits, targets2d]
    in_specs = [
        pl.BlockSpec((tb, Cp), lambda i: (i, 0)),     # logits tile
        pl.BlockSpec((tb, 1), lambda i: (i, 0)),      # targets tile
    ]
    if use_alpha:
        alpha_arr = jnp.asarray(alpha, jnp.float32).reshape(1, C)
        if Cp != C:
            alpha_arr = jnp.pad(alpha_arr, ((0, 0), (0, Cp - C)))
        ins.append(alpha_arr)
        in_specs.append(pl.BlockSpec((1, Cp), lambda i: (0, 0)))

    kernel = functools.partial(
        _focal_loss_kernel,
        gamma=float(gamma),
        ignore_index=int(ignore_index),
        use_alpha=use_alpha,
    )

    partials = pl.pallas_call(
        kernel,
        grid=(num_tiles,),
        in_specs=in_specs,
        out_specs=pl.BlockSpec((1, 8, 128), lambda i: (i, 0, 0)),
        out_shape=jax.ShapeDtypeStruct((num_tiles, 8, 128), jnp.float32),
        compiler_params=pltpu.CompilerParams(
            dimension_semantics=("parallel",),      # no cross-tile dependency
            vmem_limit_bytes=48 * 1024 * 1024),
    )(*ins)

    loss_sum = jnp.sum(partials[:, 0, 0])
    mask_sum = jnp.sum(partials[:, 0, 1])

    if reduction == "mean":
        # Matches PyTorch: 0/0 -> NaN when every row has target == ignore_index.
        return loss_sum / mask_sum
    elif reduction == "sum":
        return loss_sum
    else:
        # TODO(synk): reduction='none' needs a per-row loss output variant.
        raise NotImplementedError("only 'mean' and 'sum' reductions supported")


class FocalLoss:
    """Mirrors the PyTorch module's forward(outputs, batch) plumbing."""

    def __init__(self, alpha=None, gamma=2.0, reduction="mean", ignore_index=-100):
        self.alpha = alpha
        self.gamma = gamma
        self.reduction = reduction
        self.ignore_index = ignore_index

    def __call__(self, outputs, batch):
        if "logits" not in outputs:
            raise ValueError("Outputs must contain 'logits'")
        logits = outputs["logits"]
        if "labels" in batch:
            targets = batch["labels"]
        elif "answers" in batch:
            targets = batch["answers"]
        else:
            raise ValueError("Batch must contain 'labels' or 'answers'")
        return focal_loss(logits, targets, self.alpha, gamma=self.gamma,
                          reduction=self.reduction,
                          ignore_index=self.ignore_index)


def _reference_focal_loss(logits, targets, alpha, gamma, ignore_index,
                          reduction="mean"):
    """Pure-JAX reference mirroring the PyTorch module."""
    log_probs = jax.nn.log_softmax(logits.astype(jnp.float32), axis=-1)
    probs = jnp.exp(log_probs)
    C = logits.shape[-1]
    one_hot = (jnp.arange(C)[None, :] == targets[:, None]).astype(jnp.float32)
    mask = (targets != ignore_index).astype(jnp.float32)[:, None]
    one_hot_m = one_hot * mask
    pt = jnp.sum(one_hot_m * probs, axis=-1)
    fw = (1.0 - pt) ** gamma
    if alpha is not None:
        alpha_t = jnp.sum(one_hot * alpha[None, :], axis=-1)
        fw = fw * alpha_t
    logp_t = jnp.sum(one_hot * log_probs, axis=-1)
    loss = -fw * logp_t * mask[:, 0]
    if reduction == "mean":
        return loss.sum() / mask.sum()
    return loss.sum()


if __name__ == "__main__":
    key = jax.random.PRNGKey(0)
    k1, k2, k3, k4 = jax.random.split(key, 4)

    gamma = 2.0
    ignore_index = -100

    # Test 1: 'mean' reduction with class weights (alpha).
    B, C = 16, 32
    logits = jax.random.normal(k1, (B, C), dtype=jnp.float32)
    targets = jax.random.randint(k2, (B,), 0, C, dtype=jnp.int32)
    targets = targets.at[3].set(ignore_index).at[11].set(ignore_index)
    alpha = jnp.linspace(0.5, 1.5, C, dtype=jnp.float32)

    out = focal_loss(logits, targets, alpha, gamma=gamma, reduction="mean",
                     ignore_index=ignore_index)
    out = jax.block_until_ready(out)
    ref = _reference_focal_loss(logits, targets, alpha, gamma, ignore_index,
                                "mean")
    assert jnp.allclose(out, ref, atol=1e-5, rtol=1e-5), (out, ref)

    # Test 2: ragged batch (needs row padding) + C > 128 non-multiple of 128
    # (needs lane padding), no alpha, 'sum' reduction.
    B2, C2 = 13, 160
    logits2 = jax.random.normal(k3, (B2, C2), dtype=jnp.float32)
    targets2 = jax.random.randint(k4, (B2,), 0, C2, dtype=jnp.int32)
    targets2 = targets2.at[0].set(ignore_index)

    out2 = focal_loss(logits2, targets2, None, gamma=gamma, reduction="sum",
                      ignore_index=ignore_index)
    out2 = jax.block_until_ready(out2)
    ref2 = _reference_focal_loss(logits2, targets2, None, gamma, ignore_index,
                                 "sum")
    assert jnp.allclose(out2, ref2, atol=1e-4, rtol=1e-5), (out2, ref2)

    print("KERNEL_OK")
</pallas_src>

<mosaic_0001>
module attributes {stable_mosaic.version = 11 : i64} {
  func.func @_focal_loss_kernel(%arg0: i32, %arg1: memref<16x32xf32, #tpu.memory_space<vmem>>, %arg2: memref<16x1xi32, #tpu.memory_space<vmem>>, %arg3: memref<1x32xf32, #tpu.memory_space<vmem>>, %arg4: memref<1x8x128xf32, #tpu.memory_space<vmem>>) attributes {dimension_semantics = [#tpu.dimension_semantics<parallel>], iteration_bounds = array<i64: 1>, scalar_prefetch = 0 : i64, scratch_operands = 0 : i64, tpu.core_type = #tpu.core_type<tc>, window_params = [{transform_indices = @transform_0, window_bounds = array<i64: 16, 32>}, {transform_indices = @transform_1, window_bounds = array<i64: 16, 1>}, {pipeline_mode = #tpu.pipeline_mode<synchronous>, transform_indices = @transform_2, window_bounds = array<i64: 1, 32>}, {transform_indices = @transform_3, window_bounds = array<i64: 1, 8, 128>}]} {
    %c0 = arith.constant 0 : index
    %c0_0 = arith.constant 0 : index
    %0 = vector.load %arg1[%c0, %c0_0] : memref<16x32xf32, #tpu.memory_space<vmem>>, vector<16x32xf32>
    %c0_1 = arith.constant 0 : index
    %c0_2 = arith.constant 0 : index
    %1 = vector.load %arg2[%c0_1, %c0_2] : memref<16x1xi32, #tpu.memory_space<vmem>>, vector<16x1xi32>
    %cst = arith.constant dense<0xFF800000> : vector<16xf32>
    %2 = vector.multi_reduction <maximumf>, %0, %cst [1] : vector<16x32xf32> to vector<16xf32>
    %3 = vector.shape_cast %2 : vector<16xf32> to vector<16x1xf32>
    %4 = vector.broadcast %3 : vector<16x1xf32> to vector<16x32xf32>
    %5 = arith.subf %0, %4 : vector<16x32xf32>
    %6 = math.exp %5 : vector<16x32xf32>
    %cst_3 = arith.constant dense<0.000000e+00> : vector<16xf32>
    %7 = vector.multi_reduction <add>, %6, %cst_3 [1] : vector<16x32xf32> to vector<16xf32>
    %8 = vector.shape_cast %7 : vector<16xf32> to vector<16x1xf32>
    %9 = math.log %8 : vector<16x1xf32>
    %10 = tpu.iota {dimensions = array<i32: 1>} : vector<16x32xi32>
    %11 = vector.broadcast %1 : vector<16x1xi32> to vector<16x32xi32>
    %12 = arith.cmpi eq, %10, %11 : vector<16x32xi32>
    %c-100_i32 = arith.constant -100 : i32
    %13 = vector.broadcast %c-100_i32 : i32 to vector<16x1xi32>
    %14 = arith.cmpi ne, %1, %13 : vector<16x1xi32>
    %15 = arith.extui %14 : vector<16x1xi1> to vector<16x1xi32>
    %16 = arith.sitofp %15 : vector<16x1xi32> to vector<16x1xf32>
    %17 = vector.broadcast %9 : vector<16x1xf32> to vector<16x32xf32>
    %18 = arith.subf %5, %17 : vector<16x32xf32>
    %cst_4 = arith.constant 0.000000e+00 : f32
    %19 = vector.broadcast %cst_4 : f32 to vector<16x32xf32>
    %20 = arith.select %12, %18, %19 : vector<16x32xi1>, vector<16x32xf32>
    %cst_5 = arith.constant dense<0.000000e+00> : vector<16xf32>
    %21 = vector.multi_reduction <add>, %20, %cst_5 [1] : vector<16x32xf32> to vector<16xf32>
    %22 = vector.shape_cast %21 : vector<16xf32> to vector<16x1xf32>
    %23 = math.exp %22 : vector<16x1xf32>
    %24 = arith.mulf %23, %16 : vector<16x1xf32>
    %cst_6 = arith.constant 1.000000e+00 : f32
    %25 = vector.broadcast %cst_6 : f32 to vector<16x1xf32>
    %26 = arith.subf %25, %24 : vector<16x1xf32>
    %27 = arith.mulf %26, %26 : vector<16x1xf32>
    %c0_7 = arith.constant 0 : index
    %c0_8 = arith.constant 0 : index
    %28 = vector.load %arg3[%c0_7, %c0_8] : memref<1x32xf32, #tpu.memory_space<vmem>>, vector<1x32xf32>
    %cst_9 = arith.constant 0.000000e+00 : f32
    %29 = vector.shape_cast %28 : vector<1x32xf32> to vector<1x32xf32>
    %30 = vector.broadcast %29 : vector<1x32xf32> to vector<16x32xf32>
    %31 = vector.broadcast %cst_9 : f32 to vector<16x32xf32>
    %32 = arith.select %12, %30, %31 : vector<16x32xi1>, vector<16x32xf32>
    %cst_10 = arith.constant dense<0.000000e+00> : vector<16xf32>
    %33 = vector.multi_reduction <add>, %32, %cst_10 [1] : vector<16x32xf32> to vector<16xf32>
    %34 = vector.shape_cast %33 : vector<16xf32> to vector<16x1xf32>
    %35 = arith.mulf %27, %34 : vector<16x1xf32>
    %36 = arith.mulf %35, %22 : vector<16x1xf32>
    %cst_11 = arith.constant 0.000000e+00 : f32
    %37 = vector.broadcast %cst_11 : f32 to vector<16x1xf32>
    %38 = arith.subf %37, %36 : vector<16x1xf32>
    %39 = arith.mulf %38, %16 : vector<16x1xf32>
    %40 = vector.shape_cast %39 : vector<16x1xf32> to vector<1x16x1xf32>
    %cst_12 = arith.constant dense<0.000000e+00> : vector<1xf32>
    %41 = vector.multi_reduction <add>, %40, %cst_12 [1, 2] : vector<1x16x1xf32> to vector<1xf32>
    %42 = vector.shape_cast %41 : vector<1xf32> to vector<1x1x1xf32>
    %43 = vector.extract %42[0, 0, 0] : f32 from vector<1x1x1xf32>
    %44 = vector.shape_cast %16 : vector<16x1xf32> to vector<1x16x1xf32>
    %cst_13 = arith.constant dense<0.000000e+00> : vector<1xf32>
    %45 = vector.multi_reduction <add>, %44, %cst_13 [1, 2] : vector<1x16x1xf32> to vector<1xf32>
    %46 = vector.shape_cast %45 : vector<1xf32> to vector<1x1x1xf32>
    %47 = vector.extract %46[0, 0, 0] : f32 from vector<1x1x1xf32>
    %48 = tpu.iota {dimensions = array<i32: 2>} : vector<1x8x128xi32>
    %c0_i32 = arith.constant 0 : i32
    %49 = vector.broadcast %c0_i32 : i32 to vector<1x8x128xi32>
    %50 = arith.cmpi eq, %48, %49 : vector<1x8x128xi32>
    %c1_i32 = arith.constant 1 : i32
    %51 = vector.broadcast %c1_i32 : i32 to vector<1x8x128xi32>
    %52 = arith.cmpi eq, %48, %51 : vector<1x8x128xi32>
    %cst_14 = arith.constant 0.000000e+00 : f32
    %53 = vector.broadcast %47 : f32 to vector<1x8x128xf32>
    %54 = vector.broadcast %cst_14 : f32 to vector<1x8x128xf32>
    %55 = arith.select %52, %53, %54 : vector<1x8x128xi1>, vector<1x8x128xf32>
    %56 = vector.broadcast %43 : f32 to vector<1x8x128xf32>
    %57 = arith.select %50, %56, %55 : vector<1x8x128xi1>, vector<1x8x128xf32>
    %c0_15 = arith.constant 0 : index
    %c0_16 = arith.constant 0 : index
    %c0_17 = arith.constant 0 : index
    %58 = vector.load %arg4[%c0_15, %c0_16, %c0_17] : memref<1x8x128xf32, #tpu.memory_space<vmem>>, vector<1x8x128xf32>
    tpu.vector_store %arg4[%c0_15, %c0_16, %c0_17], %57 {strides = array<i32>} : memref<1x8x128xf32, #tpu.memory_space<vmem>>, vector<1x8x128xf32>,
    return
  }
  func.func @transform_0(%arg0: i32) -> (i32, i32) {
    %c0_i32 = arith.constant 0 : i32
    %c0_i32_0 = arith.constant 0 : i32
    return %arg0, %c0_i32 : i32, i32
  }
  func.func @transform_1(%arg0: i32) -> (i32, i32) {
    %c0_i32 = arith.constant 0 : i32
    %c0_i32_0 = arith.constant 0 : i32
    return %arg0, %c0_i32 : i32, i32
  }
  func.func @transform_2(%arg0: i32) -> (i32, i32) {
    %c0_i32 = arith.constant 0 : i32
    %c0_i32_0 = arith.constant 0 : i32
    %c0_i32_1 = arith.constant 0 : i32
    return %c0_i32, %c0_i32_0 : i32, i32
  }
  func.func @transform_3(%arg0: i32) -> (i32, i32, i32) {
    %c0_i32 = arith.constant 0 : i32
    %c0_i32_0 = arith.constant 0 : i32
    %c0_i32_1 = arith.constant 0 : i32
    return %arg0, %c0_i32, %c0_i32_0 : i32, i32, i32
  }
}

</mosaic_0001>

<bundles_post_ra>
// kernel: tpu_custom_call.1
= control target key start
LH: loop header
LB: loop body
LE: loop exit
PB: predicated region body
PF: predicated region fallthrough
CT: control target
= control target key end

     0   :  { %vm19_vm0 = vcmask 261120   ;;  %s255_s0 = inlined_call_operand.vmem [shape: f32[16,32], index: 0, kind: input, shape index: {}]   ;;  %s256_s1 = inlined_call_operand.vmem [shape: s32[16,1], index: 1, kind: input, shape index: {}]   ;;  %s257_s2 = inlined_call_operand.vmem [shape: f32[1,32], index: 2, kind: input, shape index: {}]   ;;  %s258_s3 = inlined_call_operand.hbm [shape: f32[1,8,128], index: 3, kind: output, shape index: {}]  }
   0x1   :  { %v15_v0 = vld [vmem:[%s255_s0] sm:$0xff] }
   0x2   :  { %v20_v1 = vsel %vm19_vm0, %v15_v0, -inf }
   0x3   :  { %8 = vsyncpa [#allocation3], 0  ;;  %21 = vmax.xlane.f32.xlu0 %v20_v1  ;;  %v16_v2 = vld [vmem:[%s255_s0 + $0x8] sm:$0xff]  ;;  %v17_v4 = vld [vmem:[%s256_s1] sm:$0xff]  ;;  %v196_v5 = vmov 0   ;;  %v42_v17 = vlaneseq  ;;  %v197_v38 = vmov 0.0  }
   0x4   :  { %v23_v3 = vsel %vm19_vm0, %v16_v2, -inf  ;;  %155 = vset.pattern.permute.xlu2 %v196_v5  ;;  %156 = vset.pattern.permute.xlu0 %v196_v5  ;;  %v18_v6 = vld [vmem:[%s256_s1 + $0x8] sm:$0xff]  ;;  %v157_v20 = vld [vmem:[%s257_s2] ss:$0 sm:$0xff]  ;;  %vm52_vm3 = vcmp.ne.s32.totalorder %v17_v4, 4294967196  ;;  %vm98_vm5 = vcmask 7168  }
   0x5   :  { %45 = vperm.xlu2 %155, %v17_v4   ;;  %v235_v18 = vand.u32 127, %v42_v17  ;;  %vm53_vm4 = vcmp.ne.s32.totalorder %v18_v6, 4294967196  ;;  %v146_v39 = vsel %vm52_vm3, 1.0, %v197_v38  ;;  %s198_s2 = smov [#allocation2]   ;;  %s137_s24 = sshll.u32 %s258_s3, 4  ;;  %s138_s24 = int_to_ptr.hbm [resolvable:$true] %s137_s24 }
   0x6   :  { %v147_v40 = vsel %vm53_vm4, 1.0, %v197_v38  ;;  %v111_v41 = vsel %vm98_vm5, %v146_v39, 0.0  ;;  %s135_s20 = sshll.u32 %s198_s2, 4  ;;  %s136_s20 = int_to_ptr.vmem [resolvable:$true] %s135_s20 }
   0x7   :  { %v112_v42 = vsel %vm98_vm5, %v147_v40, 0.0  ;;  %vm124_vm6 = vcmp.eq.s32.totalorder %v235_v18, 1  ;;  %vm123_vm7 = vcmp.eq.s32.totalorder %v235_v18, 0 }
   0x8   :  { %v113_v43 = vadd.f32 %v112_v42, %v111_v41 }
   0xb   :  { %24 = vmax.xlane.f32.xlu0 %v23_v3 }
   0xd   :  { %48 = vperm.xlu2 %155, %v18_v6  }
  0x5f   :  { %v46_v19 = vpop.permute.xlu2 %45 }
  0x60   :  { %vm50_vm1 = vcmp.eq.s32.totalorder %v235_v18, %v46_v19 }
  0x61   :  { %v82_v21 = vsel %vm50_vm1, %v157_v20, 0.0 }
  0x62   :  { %v84_v22 = vsel %vm19_vm0, %v82_v21, 0.0 }
  0x63   :  { %85 = vadd.xlane.f32.xlu2 %v84_v22 }
  0x67   :  { %v49_v28 = vpop.permute.xlu2 %48 }
  0x68   :  { %vm51_vm2 = vcmp.eq.s32.totalorder %v235_v18, %v49_v28 }
  0x69   :  { %v83_v33 = vsel %vm51_vm2, %v157_v20, 0.0 }
  0x6a   :  { %v87_v36 = vsel %vm19_vm0, %v83_v33, 0.0 }
  0x76   :  { %v22_v7 = vpop.xlane.xlu0 %21 }
  0x77   :  { %v26_v8 = vsub.f32 %v15_v0, %v22_v7 }
  0x79   :  { %v28_v9 = vmul.f32 1.442695, %v26_v8 }
  0x7b   :  { %158 = vpow2.f32 %v28_v9 }
  0x7e   :  { %v25_v10 = vpop.xlane.xlu0 %24 }
  0x7f   :  { %v27_v11 = vsub.f32 %v16_v2, %v25_v10 }
  0x81   :  { %v159_v12 = vpop.eup %158  ;;  %v30_v13 = vmul.f32 1.442695, %v27_v11 }
  0x82   :  { %v32_v14 = vsel %vm19_vm0, %v159_v12, 0.0 }
  0x83   :  { %160 = vpow2.f32 %v30_v13  ;;  %33 = vadd.xlane.f32.xlu1 %v32_v14 }
  0x89   :  { %v161_v15 = vpop.eup %160 }
  0x8a   :  { %v35_v16 = vsel %vm19_vm0, %v161_v15, 0.0 }
  0x8b   :  { %36 = vadd.xlane.f32.xlu1 %v35_v16 }
  0xd6   :  { %v86_v52 = vpop.xlane.xlu2 %85 }
  0xf6   :  { %v34_v23 = vpop.xlane.xlu1 %33 }
  0xf7   :  { %162 = vlog2.f32 %v34_v23 }
  0xfd   :  { %v163_v24 = vpop.eup %162 }
  0xfe   :  { %v39_v25 = vmul.f32 0.6931472, %v163_v24  ;;  %v37_v26 = vpop.xlane.xlu1 %36 }
  0xff   :  { %164 = vlog2.f32 %v37_v26 }
 0x100   :  { %v58_v27 = vsub.f32 %v26_v8, %v39_v25 }
 0x102   :  { %v60_v29 = vsel %vm50_vm1, %v58_v27, 0.0 }
 0x103   :  { %v62_v30 = vsel %vm19_vm0, %v60_v29, 0.0 }
 0x104   :  { %63 = vadd.xlane.f32.xlu0 %v62_v30 }
 0x105   :  { %v165_v31 = vpop.eup %164 }
 0x106   :  { %v41_v32 = vmul.f32 0.6931472, %v165_v31 }
 0x108   :  { %v59_v34 = vsub.f32 %v27_v11, %v41_v32 }
 0x10a   :  { %v61_v35 = vsel %vm51_vm2, %v59_v34, 0.0 }
 0x10b   :  { %v65_v37 = vsel %vm19_vm0, %v61_v35, 0.0 }
 0x10c   :  { %88 = vadd.xlane.f32.xlu0 %v87_v36  ;;  %66 = vadd.xlane.f32.xlu1 %v65_v37 }
 0x114   :  { %114 = vadd.xlane.f32.xlu0 %v113_v43 }
 0x177   :  { %v64_v44 = vpop.xlane.xlu0 %63 }
 0x178   :  { %v68_v45 = vmul.f32 1.442695, %v64_v44 }
 0x17a   :  { %166 = vpow2.f32 %v68_v45 }
 0x17f   :  { %v67_v46 = vpop.xlane.xlu1 %66  ;;  %v89_v59 = vpop.xlane.xlu0 %88 }
 0x180   :  { %v167_v47 = vpop.eup %166  ;;  %v70_v48 = vmul.f32 1.442695, %v67_v46 }
 0x181   :  { %v72_v49 = vmul.f32 %v167_v47, %v146_v39 }
 0x182   :  { %168 = vpow2.f32 %v70_v48 }
 0x183   :  { %v74_v50 = vsub.f32 1.0, %v72_v49 }
 0x185   :  { %v76_v51 = vmul.f32 %v74_v50, %v74_v50 }
 0x187   :  { %v90_v53 = vmul.f32 %v86_v52, %v76_v51  ;;  %v115_v5 = vpop.xlane.xlu0 %114 }
 0x188   :  { %v169_v54 = vpop.eup %168  ;;  %v116_v6 = vrot.slane %v115_v5, 4 }
 0x189   :  { %v73_v55 = vmul.f32 %v169_v54, %v147_v40  ;;  %v92_v56 = vmul.f32 %v90_v53, %v64_v44 }
 0x18a   :  { %v117_v7 = vadd.f32 %v116_v6, %v115_v5 }
 0x18b   :  { %v75_v57 = vsub.f32 1.0, %v73_v55  ;;  %v94_v60 = vsub.f32 0.0, %v92_v56 }
 0x18c   :  { %v118_v8 = vrot.slane %v117_v7, 2 }
 0x18d   :  { %v77_v58 = vmul.f32 %v75_v57, %v75_v57  ;;  %v96_v63 = vmul.f32 %v146_v39, %v94_v60 }
 0x18e   :  { %v119_v12 = vadd.f32 %v118_v8, %v117_v7 }
 0x18f   :  { %v91_v61 = vmul.f32 %v89_v59, %v77_v58  ;;  %v99_v2 = vsel %vm98_vm5, %v96_v63, 0.0 }
 0x190   :  { %v120_v15 = vrot.slane %v119_v12, 1 }
 0x191   :  { %v93_v62 = vmul.f32 %v91_v61, %v67_v46 }
 0x192   :  { %v121_v19 = vadd.f32 %v120_v15, %v119_v12 }
 0x193   :  { %v95_v0 = vsub.f32 0.0, %v93_v62 }
 0x195   :  { %v97_v1 = vmul.f32 %v147_v40, %v95_v0 }
 0x197   :  { %v100_v3 = vsel %vm98_vm5, %v97_v1, 0.0 }
 0x198   :  { %v101_v4 = vadd.f32 %v100_v3, %v99_v2 }
 0x19a   :  { %102 = vadd.xlane.f32.xlu1 %v101_v4 }
 0x20d   :  { %v103_v9 = vpop.xlane.xlu1 %102 }
 0x20e   :  { %v104_v10 = vrot.slane %v103_v9, 4 }
 0x210   :  { %v105_v11 = vadd.f32 %v104_v10, %v103_v9 }
 0x212   :  { %v106_v13 = vrot.slane %v105_v11, 2 }
 0x214   :  { %v107_v14 = vadd.f32 %v106_v13, %v105_v11 }
 0x216   :  { %v108_v16 = vrot.slane %v107_v14, 1 }
 0x218   :  { %v109_v17 = vadd.f32 %v108_v16, %v107_v14 }
 0x21a   :  { %148 = vpush %v109_v17 }
 0x21b   :  { %150 = vpush %v121_v19 }
 0x24b   :  { %s149_s21 = spop %148 }
 0x24c   :  { %v127_v20 = vstv %s149_s21  ;;  %s151_s25 = spop %150 }
 0x24d   :  { %v125_v21 = vstv %s151_s25 }
 0x24e   :  { %v126_v22 = vsel %vm124_vm6, %v125_v21, 0.0 }
 0x24f   :  { %v128_v23 = vsel %vm123_vm7, %v127_v20, %v126_v22 }
 0x250   :  { %129 = vst [vmem:[#allocation2] sm:$0xff] %v128_v23 }
 0x251   :  { %140 = dma.vmem_to_hbm [thread:$0]  %s136_s20, 128, %s138_s24, [#allocation3]  }
 0x252   :  { %194 = dma.done.wait [#allocation3], 128  }
 0x253   :  { %195 = vsyncadd [#allocation3], 4294967168 }
 0x254   :  { %145 = vsyncpa [#allocation3], 1 }

</bundles_post_ra>
